<compile_context>
chip_gen: v6e
topology: v6e:2x2x1
jax: 0.10.0
libtpu: 0.0.40
codegen_flags: <defaults>
</compile_context>

<pallas_src>
import jax
import jax.numpy as jnp
from jax.experimental import pallas as pl
from jax.experimental.pallas import tpu as pltpu

# Model hyper-parameters (from the PyTorch module).
EMBEDDING_DIM = 128
HIDDEN_DIM = 256
NUM_CLASS = 2
VOCAB_SIZE = 50  # small synthetic vocab


def _mlp_kernel(inp_ref, start_ref, end_ref, tbl_ref,
                w1_ref, b1_ref, w2_ref, b2_ref, out_ref):
    # Per-request refs (grid axis r = request):
    #   inp_ref   (1, N, 1) int32  token ids
    #   start_ref (1, B, 1) int32  bag start positions
    #   end_ref   (1, B, 1) int32  bag end positions (exclusive)
    #   tbl_ref   (V, E) f32;  w1 (E, H); b1 (1, H); w2 (H, C); b2 (1, C)
    #   out_ref   (1, B, C) f32
    N = inp_ref.shape[1]
    V = tbl_ref.shape[0]
    B = start_ref.shape[1]

    tokens = inp_ref[0]           # (N, 1) int32
    starts = start_ref[0]         # (B, 1) int32
    ends = end_ref[0]             # (B, 1) int32

    # ---- EmbeddingBag (mean), built entirely in VMEM/vregs ----
    # Vocab selector (N, V): one-hot of the token ids (embedding lookup as MXU matmul).
    vocab_iota = jax.lax.broadcasted_iota(jnp.int32, (N, V), 1)
    voc_onehot = (tokens == vocab_iota).astype(jnp.float32)            # (N, V)
    gathered = jnp.dot(voc_onehot, tbl_ref[...],
                       preferred_element_type=jnp.float32)             # (N, E)

    # Bag selector (B, N) with the mean folded in: entries are 1/count for
    # tokens belonging to the bag, 0 otherwise. Empty bags -> all-zero row,
    # matching nn.EmbeddingBag(mode="mean") which returns zeros for empty bags.
    pos = jax.lax.broadcasted_iota(jnp.int32, (B, N), 1)
    in_bag = jnp.logical_and(pos >= starts, pos < ends)                # (B, N)
    counts = jnp.maximum((ends - starts).astype(jnp.float32), 1.0)     # (B, 1)
    bag_sel = jnp.where(in_bag, 1.0 / counts, 0.0)                     # (B, N)
    emb = jnp.dot(bag_sel, gathered,
                  preferred_element_type=jnp.float32)                  # (B, E) mean per bag

    # ---- linear1 + ReLU ----
    h = jnp.dot(emb, w1_ref[...], preferred_element_type=jnp.float32) + b1_ref[...]
    h = jnp.maximum(h, 0.0)

    # ---- linear2 + log_softmax (dim=1, numerically stable) ----
    logits = jnp.dot(h, w2_ref[...], preferred_element_type=jnp.float32) + b2_ref[...]
    m = jnp.max(logits, axis=1, keepdims=True)
    lse = jnp.log(jnp.sum(jnp.exp(logits - m), axis=1, keepdims=True)) + m
    out_ref[0] = (logits - lse).astype(out_ref.dtype)


def mlp_forward(inputs, offsets, params):
    """Batched forward.

    inputs:  (R, N) int32 token ids (R independent requests of N tokens each).
    offsets: (R, B) int32 bag start positions, sorted, offsets[:, 0] == 0.
    """
    table, w1, b1, w2, b2 = params
    V, E = table.shape
    H = w1.shape[1]
    C = w2.shape[1]
    R, N = inputs.shape
    B = offsets.shape[1]

    # Tiny int bookkeeping only (no large HBM intermediates): bag start/end positions.
    starts = offsets.reshape(R, B, 1).astype(jnp.int32)
    ends = jnp.concatenate(
        [offsets[:, 1:], jnp.full((R, 1), N, dtype=jnp.int32)], axis=1
    ).reshape(R, B, 1)
    inputs_3d = inputs.reshape(R, N, 1).astype(jnp.int32)

    b1_2d = b1.reshape(1, H)
    b2_2d = b2.reshape(1, C)

    grid_spec = pltpu.PrefetchScalarGridSpec(
        num_scalar_prefetch=0,
        grid=(R,),
        in_specs=[
            pl.BlockSpec((1, N, 1), lambda r: (r, 0, 0)),   # token ids
            pl.BlockSpec((1, B, 1), lambda r: (r, 0, 0)),   # bag starts
            pl.BlockSpec((1, B, 1), lambda r: (r, 0, 0)),   # bag ends
            pl.BlockSpec((V, E), lambda r: (0, 0)),         # embedding table (VMEM-resident)
            pl.BlockSpec((E, H), lambda r: (0, 0)),         # w1
            pl.BlockSpec((1, H), lambda r: (0, 0)),         # b1
            pl.BlockSpec((H, C), lambda r: (0, 0)),         # w2
            pl.BlockSpec((1, C), lambda r: (0, 0)),         # b2
        ],
        out_specs=pl.BlockSpec((1, B, C), lambda r: (r, 0, 0)),
    )

    return pl.pallas_call(
        _mlp_kernel,
        out_shape=jax.ShapeDtypeStruct((R, B, C), jnp.float32),
        grid_spec=grid_spec,
        compiler_params=pltpu.CompilerParams(
            # Requests are independent: let v7x shard them across its 2 TensorCores.
            dimension_semantics=("parallel",)),
    )(inputs_3d, starts, ends, table, w1, b1_2d, w2, b2_2d)


def init_params(key, vocab_size, embedding_dim, hidden_dim, num_class):
    k_emb, k_w1, k_b1, k_w2, k_b2 = jax.random.split(key, 5)
    # nn.EmbeddingBag weight ~ N(0, 1)
    table = jax.random.normal(k_emb, (vocab_size, embedding_dim), dtype=jnp.float32)
    # nn.Linear: uniform(-1/sqrt(fan_in), 1/sqrt(fan_in)); stored as (in, out)
    lim1 = 1.0 / jnp.sqrt(embedding_dim)
    w1 = jax.random.uniform(k_w1, (embedding_dim, hidden_dim), jnp.float32, -lim1, lim1)
    b1 = jax.random.uniform(k_b1, (hidden_dim,), jnp.float32, -lim1, lim1)
    lim2 = 1.0 / jnp.sqrt(hidden_dim)
    w2 = jax.random.uniform(k_w2, (hidden_dim, num_class), jnp.float32, -lim2, lim2)
    b2 = jax.random.uniform(k_b2, (num_class,), jnp.float32, -lim2, lim2)
    return table, w1, b1, w2, b2


def reference_forward(inputs, offsets, params):
    """Pure-JAX reference matching PyTorch MLP forward (batched over requests)."""
    table, w1, b1, w2, b2 = params
    R, N = inputs.shape
    B = offsets.shape[1]

    def one(inp, off):
        pos = jnp.arange(N, dtype=jnp.int32)
        bag_ids = jnp.searchsorted(off, pos, side="right") - 1
        gathered = table[inp]                                          # (N, E)
        sums = jax.ops.segment_sum(gathered, bag_ids, num_segments=B)  # (B, E)
        counts = jax.ops.segment_sum(jnp.ones((N,), jnp.float32), bag_ids, num_segments=B)
        emb = sums / jnp.maximum(counts, 1.0)[:, None]
        h = jnp.maximum(emb @ w1 + b1, 0.0)
        logits = h @ w2 + b2
        return jax.nn.log_softmax(logits, axis=1)

    return jax.vmap(one)(inputs, offsets)


if __name__ == "__main__":
    key = jax.random.PRNGKey(0)
    k_params, k_inputs, k_off = jax.random.split(key, 3)

    params = init_params(k_params, VOCAB_SIZE, EMBEDDING_DIM, HIDDEN_DIM, NUM_CLASS)

    # R independent requests, each: 32 token indices split into 8 bags
    # (EmbeddingBag 1-D input + offsets, offsets[0] must be 0 and sorted).
    R, N_TOKENS, NUM_BAGS = 8, 32, 8
    inputs = jax.random.randint(k_inputs, (R, N_TOKENS), 0, VOCAB_SIZE, dtype=jnp.int32)

    base = jnp.array([0, 5, 9, 16, 20, 25, 28, 30], dtype=jnp.int32)
    jitter = jax.random.randint(k_off, (R, NUM_BAGS), 0, 2, dtype=jnp.int32)
    offsets = jnp.clip(base[None, :] + jitter, 0, N_TOKENS - 1)
    offsets = offsets.at[:, 0].set(0)        # EmbeddingBag requires offsets[0] == 0

    out = mlp_forward(inputs, offsets, params)
    out = jax.block_until_ready(out)

    ref = reference_forward(inputs, offsets, params)
    assert out.shape == (R, NUM_BAGS, NUM_CLASS)
    assert jnp.allclose(out, ref, atol=1e-4, rtol=1e-4), (out, ref)

    print("KERNEL_OK")
</pallas_src>

<mosaic_0001>
module attributes {stable_mosaic.version = 11 : i64} {
  func.func @_mlp_kernel(%arg0: i32, %arg1: memref<1x32x1xi32, #tpu.memory_space<vmem>>, %arg2: memref<1x8x1xi32, #tpu.memory_space<vmem>>, %arg3: memref<1x8x1xi32, #tpu.memory_space<vmem>>, %arg4: memref<50x128xf32, #tpu.memory_space<vmem>>, %arg5: memref<128x256xf32, #tpu.memory_space<vmem>>, %arg6: memref<1x256xf32, #tpu.memory_space<vmem>>, %arg7: memref<256x2xf32, #tpu.memory_space<vmem>>, %arg8: memref<1x2xf32, #tpu.memory_space<vmem>>, %arg9: memref<1x8x2xf32, #tpu.memory_space<vmem>>) attributes {dimension_semantics = [#tpu.dimension_semantics<parallel>], iteration_bounds = array<i64: 8>, scalar_prefetch = 0 : i64, scratch_operands = 0 : i64, tpu.core_type = #tpu.core_type<tc>, window_params = [{transform_indices = @transform_0, window_bounds = array<i64: 1, 32, 1>}, {transform_indices = @transform_1, window_bounds = array<i64: 1, 8, 1>}, {transform_indices = @transform_2, window_bounds = array<i64: 1, 8, 1>}, {pipeline_mode = #tpu.pipeline_mode<synchronous>, transform_indices = @transform_3, window_bounds = array<i64: 50, 128>}, {pipeline_mode = #tpu.pipeline_mode<synchronous>, transform_indices = @transform_4, window_bounds = array<i64: 128, 256>}, {pipeline_mode = #tpu.pipeline_mode<synchronous>, transform_indices = @transform_5, window_bounds = array<i64: 1, 256>}, {pipeline_mode = #tpu.pipeline_mode<synchronous>, transform_indices = @transform_6, window_bounds = array<i64: 256, 2>}, {pipeline_mode = #tpu.pipeline_mode<synchronous>, transform_indices = @transform_7, window_bounds = array<i64: 1, 2>}, {transform_indices = @transform_8, window_bounds = array<i64: 1, 8, 2>}]} {
    %c0 = arith.constant 0 : index
    %c0_0 = arith.constant 0 : index
    %c0_1 = arith.constant 0 : index
    %0 = vector.load %arg1[%c0, %c0_0, %c0_1] : memref<1x32x1xi32, #tpu.memory_space<vmem>>, vector<1x32x1xi32>
    %1 = vector.shape_cast %0 : vector<1x32x1xi32> to vector<32x1xi32>
    %c0_2 = arith.constant 0 : index
    %c0_3 = arith.constant 0 : index
    %c0_4 = arith.constant 0 : index
    %2 = vector.load %arg2[%c0_2, %c0_3, %c0_4] : memref<1x8x1xi32, #tpu.memory_space<vmem>>, vector<1x8x1xi32>
    %3 = vector.shape_cast %2 : vector<1x8x1xi32> to vector<8x1xi32>
    %c0_5 = arith.constant 0 : index
    %c0_6 = arith.constant 0 : index
    %c0_7 = arith.constant 0 : index
    %4 = vector.load %arg3[%c0_5, %c0_6, %c0_7] : memref<1x8x1xi32, #tpu.memory_space<vmem>>, vector<1x8x1xi32>
    %5 = vector.shape_cast %4 : vector<1x8x1xi32> to vector<8x1xi32>
    %6 = tpu.iota {dimensions = array<i32: 1>} : vector<32x50xi32>
    %7 = vector.broadcast %1 : vector<32x1xi32> to vector<32x50xi32>
    %8 = arith.cmpi eq, %7, %6 : vector<32x50xi32>
    %9 = arith.extui %8 : vector<32x50xi1> to vector<32x50xi32>
    %10 = arith.sitofp %9 : vector<32x50xi32> to vector<32x50xf32>
    %c0_8 = arith.constant 0 : index
    %c0_9 = arith.constant 0 : index
    %11 = vector.load %arg4[%c0_8, %c0_9] : memref<50x128xf32, #tpu.memory_space<vmem>>, vector<50x128xf32>
    %cst = arith.constant dense<0.000000e+00> : vector<32x128xf32>
    %12 = tpu.matmul %10, %11, %cst {dimension_numbers = #tpu.dot_dimension_numbers<[1], [0], [0], [1], [0, 0, 1, 1], [], []>} : vector<32x50xf32>, vector<50x128xf32>, vector<32x128xf32> -> vector<32x128xf32>
    %13 = tpu.iota {dimensions = array<i32: 1>} : vector<8x32xi32>
    %14 = vector.broadcast %3 : vector<8x1xi32> to vector<8x32xi32>
    %15 = arith.cmpi sge, %13, %14 : vector<8x32xi32>
    %16 = vector.broadcast %5 : vector<8x1xi32> to vector<8x32xi32>
    %17 = arith.cmpi slt, %13, %16 : vector<8x32xi32>
    %18 = arith.andi %15, %17 : vector<8x32xi1>
    %19 = arith.subi %5, %3 : vector<8x1xi32>
    %20 = arith.sitofp %19 : vector<8x1xi32> to vector<8x1xf32>
    %cst_10 = arith.constant 1.000000e+00 : f32
    %21 = vector.broadcast %cst_10 : f32 to vector<8x1xf32>
    %22 = arith.maximumf %20, %21 : vector<8x1xf32>
    %cst_11 = arith.constant 1.000000e+00 : f32
    %23 = vector.broadcast %cst_11 : f32 to vector<8x1xf32>
    %24 = arith.divf %23, %22 : vector<8x1xf32>
    %cst_12 = arith.constant 0.000000e+00 : f32
    %25 = vector.shape_cast %24 : vector<8x1xf32> to vector<8x1xf32>
    %26 = vector.broadcast %25 : vector<8x1xf32> to vector<8x32xf32>
    %27 = vector.broadcast %cst_12 : f32 to vector<8x32xf32>
    %28 = arith.select %18, %26, %27 : vector<8x32xi1>, vector<8x32xf32>
    %cst_13 = arith.constant dense<0.000000e+00> : vector<8x128xf32>
    %29 = tpu.matmul %28, %12, %cst_13 {dimension_numbers = #tpu.dot_dimension_numbers<[1], [0], [0], [1], [0, 0, 1, 1], [], []>} : vector<8x32xf32>, vector<32x128xf32>, vector<8x128xf32> -> vector<8x128xf32>
    %c0_14 = arith.constant 0 : index
    %c0_15 = arith.constant 0 : index
    %30 = vector.load %arg5[%c0_14, %c0_15] : memref<128x256xf32, #tpu.memory_space<vmem>>, vector<128x256xf32>
    %cst_16 = arith.constant dense<0.000000e+00> : vector<8x256xf32>
    %31 = tpu.matmul %29, %30, %cst_16 {dimension_numbers = #tpu.dot_dimension_numbers<[1], [0], [0], [1], [0, 0, 1, 1], [], []>} : vector<8x128xf32>, vector<128x256xf32>, vector<8x256xf32> -> vector<8x256xf32>
    %c0_17 = arith.constant 0 : index
    %c0_18 = arith.constant 0 : index
    %32 = vector.load %arg6[%c0_17, %c0_18] : memref<1x256xf32, #tpu.memory_space<vmem>>, vector<1x256xf32>
    %33 = vector.broadcast %32 : vector<1x256xf32> to vector<8x256xf32>
    %34 = arith.addf %31, %33 : vector<8x256xf32>
    %cst_19 = arith.constant 0.000000e+00 : f32
    %35 = vector.broadcast %cst_19 : f32 to vector<8x256xf32>
    %36 = arith.maximumf %34, %35 : vector<8x256xf32>
    %c0_20 = arith.constant 0 : index
    %c0_21 = arith.constant 0 : index
    %37 = vector.load %arg7[%c0_20, %c0_21] : memref<256x2xf32, #tpu.memory_space<vmem>>, vector<256x2xf32>
    %cst_22 = arith.constant dense<0.000000e+00> : vector<8x2xf32>
    %38 = tpu.matmul %36, %37, %cst_22 {dimension_numbers = #tpu.dot_dimension_numbers<[1], [0], [0], [1], [0, 0, 1, 1], [], []>} : vector<8x256xf32>, vector<256x2xf32>, vector<8x2xf32> -> vector<8x2xf32>
    %c0_23 = arith.constant 0 : index
    %c0_24 = arith.constant 0 : index
    %39 = vector.load %arg8[%c0_23, %c0_24] : memref<1x2xf32, #tpu.memory_space<vmem>>, vector<1x2xf32>
    %40 = vector.broadcast %39 : vector<1x2xf32> to vector<8x2xf32>
    %41 = arith.addf %38, %40 : vector<8x2xf32>
    %cst_25 = arith.constant dense<0xFF800000> : vector<8xf32>
    %42 = vector.multi_reduction <maximumf>, %41, %cst_25 [1] : vector<8x2xf32> to vector<8xf32>
    %43 = vector.shape_cast %42 : vector<8xf32> to vector<8x1xf32>
    %44 = vector.broadcast %43 : vector<8x1xf32> to vector<8x2xf32>
    %45 = arith.subf %41, %44 : vector<8x2xf32>
    %46 = math.exp %45 : vector<8x2xf32>
    %cst_26 = arith.constant dense<0.000000e+00> : vector<8xf32>
    %47 = vector.multi_reduction <add>, %46, %cst_26 [1] : vector<8x2xf32> to vector<8xf32>
    %48 = vector.shape_cast %47 : vector<8xf32> to vector<8x1xf32>
    %49 = math.log %48 : vector<8x1xf32>
    %50 = arith.addf %49, %43 : vector<8x1xf32>
    %51 = vector.broadcast %50 : vector<8x1xf32> to vector<8x2xf32>
    %52 = arith.subf %41, %51 : vector<8x2xf32>
    %c0_27 = arith.constant 0 : index
    %c0_28 = arith.constant 0 : index
    %c0_29 = arith.constant 0 : index
    %53 = vector.load %arg9[%c0_27, %c0_28, %c0_29] : memref<1x8x2xf32, #tpu.memory_space<vmem>>, vector<1x8x2xf32>
    %54 = vector.shape_cast %53 : vector<1x8x2xf32> to vector<8x2xf32>
    %55 = vector.shape_cast %52 : vector<8x2xf32> to vector<1x8x2xf32>
    tpu.vector_store %arg9[%c0_27, %c0_28, %c0_29], %55 {strides = array<i32>} : memref<1x8x2xf32, #tpu.memory_space<vmem>>, vector<1x8x2xf32>,
    return
  }
  func.func @transform_0(%arg0: i32) -> (i32, i32, i32) {
    %c0_i32 = arith.constant 0 : i32
    %c0_i32_0 = arith.constant 0 : i32
    %c0_i32_1 = arith.constant 0 : i32
    return %arg0, %c0_i32, %c0_i32_0 : i32, i32, i32
  }
  func.func @transform_1(%arg0: i32) -> (i32, i32, i32) {
    %c0_i32 = arith.constant 0 : i32
    %c0_i32_0 = arith.constant 0 : i32
    %c0_i32_1 = arith.constant 0 : i32
    return %arg0, %c0_i32, %c0_i32_0 : i32, i32, i32
  }
  func.func @transform_2(%arg0: i32) -> (i32, i32, i32) {
    %c0_i32 = arith.constant 0 : i32
    %c0_i32_0 = arith.constant 0 : i32
    %c0_i32_1 = arith.constant 0 : i32
    return %arg0, %c0_i32, %c0_i32_0 : i32, i32, i32
  }
  func.func @transform_3(%arg0: i32) -> (i32, i32) {
    %c0_i32 = arith.constant 0 : i32
    %c0_i32_0 = arith.constant 0 : i32
    %c0_i32_1 = arith.constant 0 : i32
    return %c0_i32, %c0_i32_0 : i32, i32
  }
  func.func @transform_4(%arg0: i32) -> (i32, i32) {
    %c0_i32 = arith.constant 0 : i32
    %c0_i32_0 = arith.constant 0 : i32
    %c0_i32_1 = arith.constant 0 : i32
    return %c0_i32, %c0_i32_0 : i32, i32
  }
  func.func @transform_5(%arg0: i32) -> (i32, i32) {
    %c0_i32 = arith.constant 0 : i32
    %c0_i32_0 = arith.constant 0 : i32
    %c0_i32_1 = arith.constant 0 : i32
    return %c0_i32, %c0_i32_0 : i32, i32
  }
  func.func @transform_6(%arg0: i32) -> (i32, i32) {
    %c0_i32 = arith.constant 0 : i32
    %c0_i32_0 = arith.constant 0 : i32
    %c0_i32_1 = arith.constant 0 : i32
    return %c0_i32, %c0_i32_0 : i32, i32
  }
  func.func @transform_7(%arg0: i32) -> (i32, i32) {
    %c0_i32 = arith.constant 0 : i32
    %c0_i32_0 = arith.constant 0 : i32
    %c0_i32_1 = arith.constant 0 : i32
    return %c0_i32, %c0_i32_0 : i32, i32
  }
  func.func @transform_8(%arg0: i32) -> (i32, i32, i32) {
    %c0_i32 = arith.constant 0 : i32
    %c0_i32_0 = arith.constant 0 : i32
    %c0_i32_1 = arith.constant 0 : i32
    return %arg0, %c0_i32, %c0_i32_0 : i32, i32, i32
  }
}

</mosaic_0001>

<bundles_post_ra>
// kernel: tpu_custom_call.1
= control target key start
LH: loop header
LB: loop body
LE: loop exit
PB: predicated region body
PF: predicated region fallthrough
CT: control target
= control target key end

     0   :  { %s1072_s27 = smov 0   ;;  %s1334_s0 = inlined_call_operand.vmem [shape: s32[8,32,1], index: 0, kind: input, shape index: {}]   ;;  %s1335_s1 = inlined_call_operand.vmem [shape: s32[8,8,1], index: 1, kind: input, shape index: {}]   ;;  %s1336_s2 = inlined_call_operand.vmem [shape: s32[8,8,1], index: 2, kind: input, shape index: {}]   ;;  %s1337_s3 = inlined_call_operand.vmem [shape: f32[50,128], index: 3, kind: input, shape index: {}]   ;;  %s1338_s4 = inlined_call_operand.vmem [shape: f32[128,256], index: 4, kind: input, shape index: {}]   ;;  %s1339_s5 = inlined_call_operand.vmem [shape: f32[1,256], index: 5, kind: input, shape index: {}]   ;;  %s1340_s6 = inlined_call_operand.vmem [shape: f32[256,2], index: 6, kind: input, shape index: {}]   ;;  %s1341_s7 = inlined_call_operand.vmem [shape: f32[1,2], index: 7, kind: input, shape index: {}]   ;;  %s1342_s8 = inlined_call_operand.vmem [shape: f32[8,8,2], index: 8, kind: output, shape index: {}]  }
   0x1 LB: > { %s891_s28 = sadd.s32 4294967295, %s1022_s27   ;;  %p895_p0 = scmp.ge.s32.totalorder %s1022_s27, 1  ;;  %s1022_s27 = sphi %s1072_s27, %s18_s27  }
   0x2   : > { %p280_p1 = scmp.lt.s32.totalorder %s1022_s27, 9 }
   0x4   : > { %p281_p2 = pnand %p895_p0, %p280_p1 }
   0x5   : > { %p321_p3 = scmp.lt.s32.totalorder (!%p281_p2), %s891_s28, 7 }
   0x6   : > { %284 = sbr.rel (%p281_p2) target bundleno = 1259 (0x4eb), region = 52 }
   0xb   : > { %v376_v0 = vld [vmem:[%s1337_s3 + $0x30] sm:$0x3]  ;;  %vm390_vm0 = vcmask 1041408   ;;  %v1024_v1 = vmov 0   ;;  %v375_v2 = vld [vmem:[%s1337_s3 + $0x28] sm:$0xff]  ;;  %s1344_s28 = smov (!%p321_p3, %s891_s28), 7  ;;  %v344_v19 = vlaneseq }
   0xc   : > { %1009 = vset.pattern.permute.xlu1 %v1024_v1  ;;  %1008 = vset.pattern.permute.xlu0 %v1024_v1  ;;  %v1025_v3 = vmov 0.0   ;;  %v374_v4 = vld [vmem:[%s1337_s3 + $0x20] sm:$0xff]  ;;  %s914_s13 = sshll.u32 %s1344_s28, 5  ;;  %s1090_s14 = sshll.u32 %s1344_s28, 3  ;;  %v373_v7 = vld [vmem:[%s1337_s3 + $0x18] sm:$0xff]  ;;  %v372_v13 = vld [vmem:[%s1337_s3 + $0x10] sm:$0xff] }
   0xd   : > { %966 = vmatprep.subr.msk.mxu0 %vm390_vm0, %v376_v0  ;;  %986 = vmatprep.subr.mxu1 %v1025_v3  ;;  %s325_s17 = scalar_lea.vmem %s1334_s0, %s914_s13  ;;  %s333_s20 = scalar_lea.vmem %s1336_s2, %s1090_s14  ;;  %v371_v15 = vld [vmem:[%s1337_s3 + $0x8] sm:$0xff]  ;;  %v370_v17 = vld [vmem:[%s1337_s3] sm:$0xff]  ;;  %v345_v20 = vand.u32 127, %v344_v19  ;;  %vm377_vm1 = vcmask 408576   ;;  %vm1026_vm6 = vmmov 0   ;;  %vm499_vm9 = vcmask 261120  }
   0xe   : > { %967 = vmatpush3.msk.msra.mxu0 %vm390_vm0, %v376_v0  ;;  %v340_v5 = vld [vmem:[%s325_s17 + $0x10] sm:$0xff]  ;;  %v338_v6 = vld [vmem:[%s325_s17] sm:$0xff]  ;;  %s329_s23 = scalar_lea.vmem %s1335_s1, %s1090_s14  ;;  %v341_v10 = vld [vmem:[%s325_s17 + $0x18] sm:$0xff]  ;;  %994 = vmatprep.mubr.msk.f32.mxu1 %vm1026_vm6, %v1025_v3  ;;  %vm799_vm11 = vcmask 15360   ;;  %s337_s26 = scalar_lea.vmem %s1342_s8, %s1090_s14 }
   0xf   : > { %968 = vmatprep.subr.mxu0 %v375_v2  ;;  %353 = vperm.xlu1 %1009, %v340_v5   ;;  %v343_v8 = vld [vmem:[%s333_s20] sm:$0xff]  ;;  %v339_v11 = vld [vmem:[%s325_s17 + $0x8] sm:$0xff]  ;;  %v604_v36 = vld [vmem:[%s1338_s4 + $0xf8] sm:$0xff] }
  0x10   : > { %969 = vmatpush3.msra.mxu0 %v375_v2  ;;  %347 = vperm.xlu0 %1008, %v338_v6   ;;  %v342_v9 = vld [vmem:[%s329_s23] sm:$0xff]  ;;  %v603_v37 = vld [vmem:[%s1338_s4 + $0xf0] sm:$0xff]  ;;  %v602_v39 = vld [vmem:[%s1338_s4 + $0xe8] sm:$0xff] }
  0x11   : > { %970 = vmatprep.subr.mxu0 %v374_v4  ;;  %v488_v12 = vsub.s32 %v343_v8, %v342_v9  ;;  %v601_v40 = vld [vmem:[%s1338_s4 + $0xe0] sm:$0xff]  ;;  %v600_v41 = vld [vmem:[%s1338_s4 + $0xd8] sm:$0xff]  ;;  %v599_v42 = vld [vmem:[%s1338_s4 + $0xd0] sm:$0xff] }
  0x12   : > { %971 = vmatpush3.msra.mxu0 %v374_v4  ;;  %v598_v43 = vld [vmem:[%s1338_s4 + $0xc8] sm:$0xff]  ;;  %v597_v44 = vld [vmem:[%s1338_s4 + $0xc0] sm:$0xff]  ;;  %v596_v45 = vld [vmem:[%s1338_s4 + $0xb8] sm:$0xff] }
  0x13   : > { %972 = vmatprep.subr.mxu0 %v373_v7  ;;  %v489_v14 = vcvt.s32.f32 %v488_v12  ;;  %356 = vperm.xlu1 %1009, %v341_v10   ;;  %v595_v46 = vld [vmem:[%s1338_s4 + $0xb0] sm:$0xff]  ;;  %v594_v47 = vld [vmem:[%s1338_s4 + $0xa8] sm:$0xff]  ;;  %v593_v48 = vld [vmem:[%s1338_s4 + $0xa0] sm:$0xff] }
  0x14   : > { %973 = vmatpush3.msra.mxu0 %v373_v7  ;;  %350 = vperm.xlu0 %1008, %v339_v11   ;;  %v592_v49 = vld [vmem:[%s1338_s4 + $0x98] sm:$0xff]  ;;  %v591_v50 = vld [vmem:[%s1338_s4 + $0x90] sm:$0xff]  ;;  %v590_v51 = vld [vmem:[%s1338_s4 + $0x88] sm:$0xff] }
  0x15   : > { %v490_v16 = vmax.f32 %v489_v14, 1.0  ;;  %974 = vmatprep.subr.mxu0 %v372_v13  ;;  %v589_v52 = vld [vmem:[%s1338_s4 + $0x80] sm:$0xff]  ;;  %v588_v53 = vld [vmem:[%s1338_s4 + $0x78] sm:$0xff]  ;;  %v587_v54 = vld [vmem:[%s1338_s4 + $0x70] sm:$0xff] }
  0x16   : > { %975 = vmatpush3.msra.mxu0 %v372_v13  ;;  %v586_v55 = vld [vmem:[%s1338_s4 + $0x68] sm:$0xff]  ;;  %v585_v56 = vld [vmem:[%s1338_s4 + $0x60] sm:$0xff]  ;;  %v584_v57 = vld [vmem:[%s1338_s4 + $0x58] sm:$0xff] }
  0x17   : > { %1010 = vrcp.f32 %v490_v16  ;;  %976 = vmatprep.subr.mxu0 %v371_v15  ;;  %484 = vperm.xlu1 %1009, %v343_v8   ;;  %v583_v58 = vld [vmem:[%s1338_s4 + $0x50] sm:$0xff]  ;;  %v582_v59 = vld [vmem:[%s1338_s4 + $0x48] sm:$0xff]  ;;  %v581_v60 = vld [vmem:[%s1338_s4 + $0x40] sm:$0xff] }
  0x18   : > { %480 = vperm.xlu0 %1008, %v342_v9   ;;  %977 = vmatpush3.msra.mxu0 %v371_v15  ;;  %v580_v61 = vld [vmem:[%s1338_s4 + $0x38] sm:$0xff]  ;;  %v579_v62 = vld [vmem:[%s1338_s4 + $0x30] sm:$0xff]  ;;  %v578_v63 = vld [vmem:[%s1338_s4 + $0x28] sm:$0xff] }
  0x19   : > { %978 = vmatprep.subr.mxu0 %v370_v17  ;;  %v577_v0 = vld [vmem:[%s1338_s4 + $0x20] sm:$0xff]  ;;  %v576_v1 = vld [vmem:[%s1338_s4 + $0x18] sm:$0xff]  ;;  %v575_v2 = vld [vmem:[%s1338_s4 + $0x10] sm:$0xff] }
  0x1a   : > { %979 = vmatpush3.msra.mxu0 %v370_v17  ;;  %v573_v4 = vld [vmem:[%s1338_s4] sm:$0xff]  ;;  %v721_v5 = vld [vmem:[%s1340_s6 + $0xf8] sm:$0xff]  ;;  %v720_v7 = vld [vmem:[%s1340_s6 + $0xf0] sm:$0xff] }
  0x1b   : > { %v705_v6 = vld [vmem:[%s1340_s6 + $0x78] sm:$0xff]  ;;  %931 = vmatprep.subr.mxu0 %v721_v5  ;;  %v704_v8 = vld [vmem:[%s1340_s6 + $0x70] sm:$0xff]  ;;  %v719_v9 = vld [vmem:[%s1340_s6 + $0xe8] sm:$0xff] }
  0x1c   : > { %v703_v10 = vld [vmem:[%s1340_s6 + $0x68] sm:$0xff]  ;;  %v718_v11 = vld [vmem:[%s1340_s6 + $0xe0] sm:$0xff]  ;;  %v717_v13 = vld [vmem:[%s1340_s6 + $0xd8] sm:$0xff] }
  0x1d   : > { %v702_v12 = vld [vmem:[%s1340_s6 + $0x60] sm:$0xff]  ;;  %v701_v14 = vld [vmem:[%s1340_s6 + $0x58] sm:$0xff]  ;;  %v716_v15 = vld [vmem:[%s1340_s6 + $0xd0] sm:$0xff] }
  0x1e   : > { %v700_v16 = vld [vmem:[%s1340_s6 + $0x50] sm:$0xff]  ;;  %v715_v17 = vld [vmem:[%s1340_s6 + $0xc8] sm:$0xff] }
  0x24   : > { %v1011_v18 = vpop.eup %1010 }
  0x25   : > { %495 = vperm.xlu0 %1008, %v1011_v18   ;;  %v699_v18 = vld [vmem:[%s1340_s6 + $0x48] sm:$0xff] }
  0x8a   : > { %v354_v21 = vpop.permute.xlu1 %353 }
  0x8b   : > { %v348_v22 = vpop.permute.xlu0 %347  ;;  %vm360_vm3 = vcmp.eq.s32.totalorder %v354_v21, %v345_v20  ;;  %v698_v21 = vld [vmem:[%s1340_s6 + $0x40] sm:$0xff] }
  0x8c   : > { %vm358_vm2 = vcmp.eq.s32.totalorder %v348_v22, %v345_v20  ;;  %v903_v26 = vsel %vm360_vm3, 1.0, %v1025_v3  ;;  %v713_v22 = vld [vmem:[%s1340_s6 + $0xb8] sm:$0xff] }
  0x8d   : > { %v901_v23 = vsel %vm358_vm2, 1.0, %v1025_v3 }
  0x8e   : > { %980 = vmatprep.mubr.msk.f32.mxu0 %vm377_vm1, %v901_v23  ;;  %v357_v24 = vpop.permute.xlu1 %356  ;;  %v697_v23 = vld [vmem:[%s1340_s6 + $0x38] sm:$0xff] }
  0x8f   : > { %v351_v25 = vpop.permute.xlu0 %350  ;;  %vm361_vm5 = vcmp.eq.s32.totalorder %v357_v24, %v345_v20  ;;  %v712_v24 = vld [vmem:[%s1340_s6 + $0xb0] sm:$0xff] }
  0x90   : > { %vm359_vm4 = vcmp.eq.s32.totalorder %v351_v25, %v345_v20  ;;  %v904_v28 = vsel %vm361_vm5, 1.0, %v1025_v3  ;;  %v696_v25 = vld [vmem:[%s1340_s6 + $0x30] sm:$0xff] }
  0x91   : > { %v902_v27 = vsel %vm359_vm4, 1.0, %v1025_v3 }
  0x92   : > { %981 = vmatmul.mubr.msk.f32.vlgmr.msra.gmra.mxu0 %vm377_vm1, %v902_v27  ;;  %v485_v31 = vpop.permute.xlu1 %484  ;;  %v695_v27 = vld [vmem:[%s1340_s6 + $0x28] sm:$0xff] }
  0x93   : > { %983 = vmatprep.mubr.msk.f32.mxu0 %vm377_vm1, %v903_v26  ;;  %v481_v32 = vpop.permute.xlu0 %480  ;;  %vm486_vm7 = vcmp.lt.s32.totalorder %v345_v20, %v485_v31  ;;  %932 = vmatpush3.msra.mxu0 %v705_v6  ;;  %v711_v26 = vld [vmem:[%s1340_s6 + $0xa8] sm:$0xff] }
  0x94   : > { %vm482_vm8 = vcmp.ge.s32.totalorder %v345_v20, %v481_v32  ;;  %933 = vmatprep.subr.mxu0 %v720_v7  ;;  %v714_v20 = vld [vmem:[%s1340_s6 + $0xc0] sm:$0xff]  ;;  %v709_v32 = vld [vmem:[%s1340_s6 + $0x98] sm:$0xff] }
  0x95   : > { %vm487_vm10 = vmand %vm482_vm8, %vm486_vm7  ;;  %934 = vmatpush3.msra.mxu0 %v704_v8 }
  0x96   : > { %984 = vmatmul.mubr.msk.f32.gmra.mxu0 %vm377_vm1, %v904_v28  ;;  %935 = vmatprep.subr.mxu0 %v719_v9  ;;  %v710_v28 = vld [vmem:[%s1340_s6 + $0xa0] sm:$0xff] }
  0x97   : > { %936 = vmatpush3.msra.mxu0 %v703_v10 }
  0x98   : > { %937 = vmatprep.subr.mxu0 %v718_v11 }
  0x99   : > { %938 = vmatpush3.msra.mxu0 %v702_v12 }
  0x9a   : > { %939 = vmatprep.subr.mxu0 %v717_v13 }
  0x9b   : > { %940 = vmatpush3.msra.mxu0 %v701_v14 }
  0x9c   : > { %941 = vmatprep.subr.mxu0 %v716_v15 }
  0x9d   : > { %942 = vmatpush3.msra.mxu0 %v700_v16 }
  0x9e   : > { %943 = vmatprep.subr.mxu0 %v715_v17 }
  0x9f   : > { %944 = vmatpush3.msra.mxu0 %v699_v18 }
  0xa0   : > { %v496_v35 = vpop.permute.xlu0 %495  ;;  %945 = vmatprep.subr.mxu0 %v714_v20 }
  0xa1   : > { %v498_v38 = vsel %vm487_vm10, %v496_v35, 0.0  ;;  %946 = vmatpush3.msra.mxu0 %v698_v21  ;;  %v692_v35 = vld [vmem:[%s1340_s6 + $0x10] sm:$0xff] }
  0xa2   : > { %947 = vmatprep.subr.mxu0 %v713_v22 }
  0xa3   : > { %948 = vmatpush3.msra.mxu0 %v697_v23 }
  0xa4   : > { %949 = vmatprep.subr.mxu0 %v712_v24 }
  0xa5   : > { %950 = vmatpush3.msra.mxu0 %v696_v25 }
  0xa6   : > { %951 = vmatprep.subr.mxu0 %v711_v26 }
  0xa7   : > { %952 = vmatpush3.msra.mxu0 %v695_v27 }
  0xa8   : > { %953 = vmatprep.subr.mxu0 %v710_v28 }
 0x152   : > { %v982_v29 = vpop.f32.mrf.mxu0 }
 0x154   : > { %v460_v30 = vpop.f32.mrf.mxu0 }
 0x156   : > { %v985_v33 = vpop.f32.mrf.mxu0 }
 0x157   : > { %987 = vmatpush3.msra.mxu1 %v985_v33  ;;  %v693_v33 = vld [vmem:[%s1340_s6 + $0x18] sm:$0xff] }
 0x158   : > { %v470_v34 = vpop.f32.mrf.mxu0  ;;  %988 = vmatprep.subr.mxu1 %v1025_v3 }
 0x159   : > { %989 = vmatpush3.msra.mxu1 %v470_v34  ;;  %v708_v34 = vld [vmem:[%s1340_s6 + $0x90] sm:$0xff] }
 0x15a   : > { %990 = vmatprep.subr.mxu1 %v1025_v3 }
 0x15b   : > { %991 = vmatpush3.msra.mxu1 %v982_v29  ;;  %v694_v29 = vld [vmem:[%s1340_s6 + $0x20] sm:$0xff] }
 0x15c   : > { %992 = vmatprep.subr.mxu1 %v1025_v3  ;;  %954 = vmatpush3.msra.mxu0 %v694_v29 }
 0x15d   : > { %993 = vmatpush3.msra.mxu1 %v460_v30  ;;  %955 = vmatprep.subr.mxu0 %v709_v32 }
 0x15e   : > { %995 = vmatmul.mubr.msk.f32.vlgmr.msra.gmra.mxu1 %vm499_vm9, %v498_v38  ;;  %617 = vmatprep.subr.mxu1 %v604_v36  ;;  %v707_v36 = vld [vmem:[%s1340_s6 + $0x88] sm:$0xff]  ;;  %v706_v38 = vld [vmem:[%s1340_s6 + $0x80] sm:$0xff] }
 0x15f   : > { %618 = vmatpush1.msra.mxu1 %v603_v37  ;;  %681 = vmatprep.mubr.f32.mxu1 %v1025_v3  ;;  %v574_v3 = vld [vmem:[%s1338_s4 + $0x8] sm:$0xff] }
 0x160   : > { %619 = vmatprep.subr.mxu1 %v602_v39  ;;  %956 = vmatpush3.msra.mxu0 %v693_v33  ;;  %v691_v37 = vld [vmem:[%s1340_s6 + $0x8] sm:$0xff]  ;;  %v690_v39 = vld [vmem:[%s1340_s6] sm:$0xff] }
 0x161   : > { %620 = vmatpush1.msra.mxu1 %v601_v40  ;;  %957 = vmatprep.subr.mxu0 %v708_v34  ;;  %v608_v40 = vshrl.u32 %v344_v19, 7  ;;  %v911_v19 = vld [vmem:[%s1341_s7] ss:$0 sm:$0xff] }
 0x162   : > { %621 = vmatprep.subr.mxu1 %v600_v41  ;;  %958 = vmatpush3.msra.mxu0 %v692_v35 }
 0x163   : > { %622 = vmatpush1.msra.mxu1 %v599_v42  ;;  %959 = vmatprep.subr.mxu0 %v707_v36  ;;  %v609_v41 = vsub.s32 0, %v608_v40  ;;  %v605_v42 = vld [vmem:[%s1339_s5] sm:$0x3] }
 0x164   : > { %623 = vmatprep.subr.mxu1 %v598_v43  ;;  %960 = vmatpush3.msra.mxu0 %v691_v37  ;;  %v613_v43 = vsub.s32 1, %v608_v40 }
 0x165   : > { %624 = vmatpush1.msra.mxu1 %v597_v44  ;;  %961 = vmatprep.subr.mxu0 %v706_v38  ;;  %v610_v44 = vrot.slane %v605_v42, %v609_v41 }
 0x166   : > { %625 = vmatprep.subr.mxu1 %v596_v45  ;;  %962 = vmatpush3.msra.mxu0 %v690_v39  ;;  %v614_v45 = vrot.slane %v605_v42, %v613_v43 }
 0x167   : > { %626 = vmatpush1.msra.mxu1 %v595_v46 }
 0x168   : > { %627 = vmatprep.subr.mxu1 %v594_v47 }
 0x169   : > { %628 = vmatpush1.msra.mxu1 %v593_v48 }
 0x16a   : > { %629 = vmatprep.subr.mxu1 %v592_v49 }
 0x16b   : > { %630 = vmatpush1.msra.mxu1 %v591_v50 }
 0x16c   : > { %631 = vmatprep.subr.mxu1 %v590_v51 }
 0x16d   : > { %632 = vmatpush1.msra.mxu1 %v589_v52 }
 0x16e   : > { %633 = vmatprep.subr.mxu1 %v588_v53 }
 0x16f   : > { %634 = vmatpush1.msra.mxu1 %v587_v54 }
 0x170   : > { %635 = vmatprep.subr.mxu1 %v586_v55 }
 0x171   : > { %636 = vmatpush1.msra.mxu1 %v585_v56 }
 0x172   : > { %637 = vmatprep.subr.mxu1 %v584_v57 }
 0x173   : > { %638 = vmatpush1.msra.mxu1 %v583_v58 }
 0x174   : > { %639 = vmatprep.subr.mxu1 %v582_v59 }
 0x175   : > { %640 = vmatpush1.msra.mxu1 %v581_v60 }
 0x176   : > { %641 = vmatprep.subr.mxu1 %v580_v61 }
 0x177   : > { %642 = vmatpush1.msra.mxu1 %v579_v62 }
 0x178   : > { %643 = vmatprep.subr.mxu1 %v578_v63 }
 0x179   : > { %644 = vmatpush1.msra.mxu1 %v577_v0 }
 0x17a   : > { %645 = vmatprep.subr.mxu1 %v576_v1 }
 0x17b   : > { %646 = vmatpush1.msra.mxu1 %v575_v2 }
 0x17c   : > { %647 = vmatprep.subr.mxu1 %v574_v3 }
 0x17d   : > { %648 = vmatpush1.msra.mxu1 %v573_v4 }
 0x21e   : > { %v569_v30 = vpop.f32.mrf.mxu1 }
 0x21f   : > { %682 = vmatmul.mubr.f32.vlgmr.msra.gmra.mxu1 %v569_v30 }
 0x220   : > { %v996_v31 = vpop.f32.mrf.mxu1 }
 0x2df   : > { %v683_v46 = vpop.f32.mrf.mxu1 }
 0x2e0   : > { %v684_v47 = vadd.f32 %v683_v46, %v610_v44 }
 0x2e1   : > { %v685_v48 = vpop.f32.mrf.mxu1 }
 0x2e2   : > { %v686_v49 = vadd.f32 %v685_v48, %v614_v45  ;;  %v688_v51 = vmax.f32 %v684_v47, 0.0 }
 0x2e4   : > { %v689_v50 = vmax.f32 %v686_v49, 0.0 }
 0x2e6   : > { %793 = vmatprep.mubr.f32.mxu0 %v689_v50 }
 0x2e7   : > { %794 = vmatmul.mubr.f32.vlgmr.msra.gmra.mxu0 %v688_v51 }
 0x3a7   : > { %v963_v52 = vpop.f32.mrf.mxu0 }
 0x3a9   : > { %v964_v53 = vpop.f32.mrf.mxu0 }
 0x3aa   : > { %v965_v54 = vadd.f32 %v964_v53, %v963_v52 }
 0x3ac   : > { %v796_v55 = vadd.f32 %v965_v54, %v911_v19 }
 0x3ae   : > { %v800_v56 = vsel %vm799_vm11, %v796_v55, -inf }
 0x3af   : > { %801 = vmax.xlane.f32.xlu1 %v800_v56 }
 0x438   : > { %v802_v57 = vpop.xlane.xlu1 %801 }
 0x439   : > { %v803_v58 = vsub.f32 %v796_v55, %v802_v57 }
 0x43b   : > { %v804_v59 = vmul.f32 1.442695, %v803_v58 }
 0x43d   : > { %1012 = vpow2.f32 %v804_v59 }
 0x44a   : > { %v1013_v60 = vpop.eup %1012 }
 0x44b   : > { %v806_v61 = vsel %vm799_vm11, %v1013_v60, 0.0 }
 0x44c   : > { %807 = vadd.xlane.f32.xlu0 %v806_v61 }
 0x4d5   : > { %v808_v62 = vpop.xlane.xlu0 %807 }
 0x4d6   : > { %1014 = vlog2.f32 %v808_v62 }
 0x4e3   : > { %v1015_v63 = vpop.eup %1014 }
 0x4e4   : > { %v810_v0 = vmul.f32 0.6931472, %v1015_v63 }
 0x4e6   : > { %v811_v1 = vadd.f32 %v810_v0, %v802_v57 }
 0x4e8   : > { %v812_v2 = vsub.f32 %v796_v55, %v811_v1 }
 0x4ea   : > { %813 = vst.msk [vmem:[%s337_s26] sm:$0xff] %vm799_vm11, %v812_v2 }
 0x4eb PF: > { %s18_s27 = sadd.s32 1, %s1022_s27  }
 0x4ec   : > { %p15_p4 = scmp.ge.s32.totalorder %s18_s27, 10  }
 0x4ee   :  { %17 = sbr.rel (!%p15_p4) target bundleno = 1 (0x1), region = 88 }

</bundles_post_ra>
